<compile_context>
chip_gen: v6e
topology: v6e:2x2x1
jax: 0.10.0
libtpu: 0.0.40
codegen_flags: <defaults>
</compile_context>

<pallas_src>
import jax
import jax.numpy as jnp
from jax.experimental import pallas as pl
from jax.experimental.pallas import tpu as pltpu

# Model hyper-parameters (small shapes consistent with the module).
IN_CHANNELS = 3      # in_channels
EMB_HIDDEN = 32      # emb_hidden
NB_LAYER = 3         # nb_layer  (1 input Linear + 2 hidden Linear)
EMB_DIM = 3          # emb_dim (default)

MIN_TILE = 128       # lane granularity for the point axis
MAX_TILE = 1024      # rows per grid step cap (footprint stays tiny)


def embedding_kernel(x_ref, w0_ref, b0_ref, wh_ref, bh_ref, we_ref, be_ref, out_ref):
    # Feature-major: x_ref is [in_channels, TILE_N]; points sit on the lane axis.
    # First layer: h = tanh(W0 @ x + b0)   -> [EMB_HIDDEN, TILE_N]
    h = jnp.tanh(
        jnp.dot(w0_ref[...], x_ref[...], preferred_element_type=jnp.float32)
        + b0_ref[...]
    )
    # Hidden layers: h = tanh(Wl @ h + bl)   (static unroll)
    for l in range(NB_LAYER - 1):
        h = jnp.tanh(
            jnp.dot(wh_ref[l], h, preferred_element_type=jnp.float32) + bh_ref[l]
        )
    # Embedding head: [EMB_DIM, EMB_HIDDEN] @ [EMB_HIDDEN, TILE_N] -> [EMB_DIM, TILE_N]
    # Unmasked lane-dense store; no column padding needed.
    out_ref[...] = (
        jnp.dot(we_ref[...], h, preferred_element_type=jnp.float32) + be_ref[...]
    )


def init_params(key):
    """Deterministic parameters matching torch.nn.Linear default init.

    Weights are stored PyTorch-style as (out_features, in_features) so the
    kernel can use them directly in the feature-major matmuls; biases are
    (out_features, 1) so they broadcast along the lane (point) axis.
    """
    def lin(k, fan_in, fan_out):
        k1, k2 = jax.random.split(k)
        bound = float(fan_in) ** -0.5
        w = jax.random.uniform(k1, (fan_out, fan_in), jnp.float32, -bound, bound)
        b = jax.random.uniform(k2, (fan_out, 1), jnp.float32, -bound, bound)
        return w, b

    keys = jax.random.split(key, NB_LAYER + 1)
    w0, b0 = lin(keys[0], IN_CHANNELS, EMB_HIDDEN)          # [H,C], [H,1]

    whs, bhs = [], []
    for l in range(NB_LAYER - 1):
        w, b = lin(keys[1 + l], EMB_HIDDEN, EMB_HIDDEN)
        whs.append(w)
        bhs.append(b)
    wh = jnp.stack(whs)                                      # [NB_LAYER-1, H, H]
    bh = jnp.stack(bhs)                                      # [NB_LAYER-1, H, 1]

    we, be = lin(keys[NB_LAYER], EMB_HIDDEN, EMB_DIM)        # [E,H], [E,1]
    return (w0, b0, wh, bh, we, be)


def _choose_tile(n):
    """Large row tiles to amortize per-step overhead, but keep >=2 grid steps
    when possible so v7x's two TensorCores both get rows."""
    n_min = MIN_TILE * pl.cdiv(n, MIN_TILE)
    if n_min >= 2 * MIN_TILE:
        tile = min(MAX_TILE, max(MIN_TILE, (n_min // 2) // MIN_TILE * MIN_TILE))
    else:
        tile = MIN_TILE
    return tile


@jax.jit
def embedding_forward(x, params):
    """x: [N, in_channels] float32  ->  [N, emb_dim] float32."""
    w0, b0, wh, bh, we, be = params
    n = x.shape[0]
    tile_n = _choose_tile(n)
    n_pad = tile_n * pl.cdiv(n, tile_n)

    # Present the input feature-major (points on the lane axis).  The small
    # transpose/pad copy of a [N,3] array is negligible; for large N callers
    # should keep data feature-major / lane-aligned upstream to avoid it.
    # TODO(synk): accept feature-major input directly to skip this copy.
    x_t = jnp.transpose(x)                              # [C, N]
    if n_pad != n:
        x_t = jnp.pad(x_t, ((0, 0), (0, n_pad - n)))    # [C, n_pad]

    grid = (n_pad // tile_n,)

    flops = 2 * n_pad * (
        IN_CHANNELS * EMB_HIDDEN
        + (NB_LAYER - 1) * EMB_HIDDEN * EMB_HIDDEN
        + EMB_HIDDEN * EMB_DIM
    )
    bytes_accessed = 4 * (
        x_t.size + w0.size + b0.size + wh.size + bh.size + we.size + be.size
        + EMB_DIM * n_pad
    )

    out_t = pl.pallas_call(
        embedding_kernel,
        out_shape=jax.ShapeDtypeStruct((EMB_DIM, n_pad), jnp.float32),
        grid_spec=pltpu.PrefetchScalarGridSpec(
            num_scalar_prefetch=0,
            grid=grid,
            in_specs=[
                pl.BlockSpec((IN_CHANNELS, tile_n), lambda i: (0, i)),
                pl.BlockSpec((EMB_HIDDEN, IN_CHANNELS), lambda i: (0, 0)),
                pl.BlockSpec((EMB_HIDDEN, 1), lambda i: (0, 0)),
                pl.BlockSpec((NB_LAYER - 1, EMB_HIDDEN, EMB_HIDDEN),
                             lambda i: (0, 0, 0)),
                pl.BlockSpec((NB_LAYER - 1, EMB_HIDDEN, 1),
                             lambda i: (0, 0, 0)),
                pl.BlockSpec((EMB_DIM, EMB_HIDDEN), lambda i: (0, 0)),
                pl.BlockSpec((EMB_DIM, 1), lambda i: (0, 0)),
            ],
            out_specs=pl.BlockSpec((EMB_DIM, tile_n), lambda i: (0, i)),
        ),
        compiler_params=pltpu.CompilerParams(
            dimension_semantics=("parallel",)),
        cost_estimate=pl.CostEstimate(
            flops=flops,
            transcendentals=n_pad * EMB_HIDDEN * NB_LAYER,
            bytes_accessed=bytes_accessed),
    )(x_t, w0, b0, wh, bh, we, be)

    return jnp.transpose(out_t[:, :n])                  # [N, EMB_DIM]


def ref_forward(x, params):
    """Pure-JAX reference matching the PyTorch forward()."""
    w0, b0, wh, bh, we, be = params
    h = jnp.tanh(x @ w0.T + b0[:, 0])
    for l in range(NB_LAYER - 1):
        h = jnp.tanh(h @ wh[l].T + bh[l, :, 0])
    return h @ we.T + be[:, 0]


if __name__ == "__main__":
    key = jax.random.PRNGKey(0)
    k_x, k_p = jax.random.split(key)

    N_POINTS = 256   # small toy batch: 2 grid steps of 128 rows (one per v7x TC)
    x = jax.random.normal(k_x, (N_POINTS, IN_CHANNELS), jnp.float32)
    params = init_params(k_p)

    out = embedding_forward(x, params)
    jax.block_until_ready(out)

    assert out.shape == (N_POINTS, EMB_DIM) and out.dtype == jnp.float32
    ref = ref_forward(x, params)
    assert jnp.allclose(out, ref, atol=1e-4, rtol=1e-4), "mismatch vs. JAX reference"

    print("KERNEL_OK")
</pallas_src>

<mosaic_0001>
module attributes {stable_mosaic.version = 11 : i64} {
  func.func @embedding_kernel(%arg0: i32, %arg1: memref<3x128xf32, #tpu.memory_space<vmem>>, %arg2: memref<32x3xf32, #tpu.memory_space<vmem>>, %arg3: memref<32x1xf32, #tpu.memory_space<vmem>>, %arg4: memref<2x32x32xf32, #tpu.memory_space<vmem>>, %arg5: memref<2x32x1xf32, #tpu.memory_space<vmem>>, %arg6: memref<3x32xf32, #tpu.memory_space<vmem>>, %arg7: memref<3x1xf32, #tpu.memory_space<vmem>>, %arg8: memref<3x128xf32, #tpu.memory_space<vmem>>) attributes {dimension_semantics = [#tpu.dimension_semantics<parallel>], iteration_bounds = array<i64: 2>, scalar_prefetch = 0 : i64, scratch_operands = 0 : i64, tpu.core_type = #tpu.core_type<tc>, window_params = [{transform_indices = @transform_0, window_bounds = array<i64: 3, 128>}, {pipeline_mode = #tpu.pipeline_mode<synchronous>, transform_indices = @transform_1, window_bounds = array<i64: 32, 3>}, {pipeline_mode = #tpu.pipeline_mode<synchronous>, transform_indices = @transform_2, window_bounds = array<i64: 32, 1>}, {pipeline_mode = #tpu.pipeline_mode<synchronous>, transform_indices = @transform_3, window_bounds = array<i64: 2, 32, 32>}, {pipeline_mode = #tpu.pipeline_mode<synchronous>, transform_indices = @transform_4, window_bounds = array<i64: 2, 32, 1>}, {pipeline_mode = #tpu.pipeline_mode<synchronous>, transform_indices = @transform_5, window_bounds = array<i64: 3, 32>}, {pipeline_mode = #tpu.pipeline_mode<synchronous>, transform_indices = @transform_6, window_bounds = array<i64: 3, 1>}, {transform_indices = @transform_7, window_bounds = array<i64: 3, 128>}]} {
    %c0 = arith.constant 0 : index
    %c0_0 = arith.constant 0 : index
    %0 = vector.load %arg2[%c0, %c0_0] : memref<32x3xf32, #tpu.memory_space<vmem>>, vector<32x3xf32>
    %c0_1 = arith.constant 0 : index
    %c0_2 = arith.constant 0 : index
    %1 = vector.load %arg1[%c0_1, %c0_2] : memref<3x128xf32, #tpu.memory_space<vmem>>, vector<3x128xf32>
    %cst = arith.constant dense<0.000000e+00> : vector<32x128xf32>
    %2 = tpu.matmul %0, %1, %cst {dimension_numbers = #tpu.dot_dimension_numbers<[1], [0], [0], [1], [0, 0, 1, 1], [], []>} : vector<32x3xf32>, vector<3x128xf32>, vector<32x128xf32> -> vector<32x128xf32>
    %c0_3 = arith.constant 0 : index
    %c0_4 = arith.constant 0 : index
    %3 = vector.load %arg3[%c0_3, %c0_4] : memref<32x1xf32, #tpu.memory_space<vmem>>, vector<32x1xf32>
    %4 = vector.broadcast %3 : vector<32x1xf32> to vector<32x128xf32>
    %5 = arith.addf %2, %4 : vector<32x128xf32>
    %6 = math.tanh %5 : vector<32x128xf32>
    %c0_5 = arith.constant 0 : index
    %c0_6 = arith.constant 0 : index
    %c0_7 = arith.constant 0 : index
    %7 = vector.load %arg4[%c0_5, %c0_6, %c0_7] : memref<2x32x32xf32, #tpu.memory_space<vmem>>, vector<1x32x32xf32>
    %8 = vector.shape_cast %7 : vector<1x32x32xf32> to vector<32x32xf32>
    %cst_8 = arith.constant dense<0.000000e+00> : vector<32x128xf32>
    %9 = tpu.matmul %8, %6, %cst_8 {dimension_numbers = #tpu.dot_dimension_numbers<[1], [0], [0], [1], [0, 0, 1, 1], [], []>} : vector<32x32xf32>, vector<32x128xf32>, vector<32x128xf32> -> vector<32x128xf32>
    %c0_9 = arith.constant 0 : index
    %c0_10 = arith.constant 0 : index
    %c0_11 = arith.constant 0 : index
    %10 = vector.load %arg5[%c0_9, %c0_10, %c0_11] : memref<2x32x1xf32, #tpu.memory_space<vmem>>, vector<1x32x1xf32>
    %11 = vector.shape_cast %10 : vector<1x32x1xf32> to vector<32x1xf32>
    %12 = vector.broadcast %11 : vector<32x1xf32> to vector<32x128xf32>
    %13 = arith.addf %9, %12 : vector<32x128xf32>
    %14 = math.tanh %13 : vector<32x128xf32>
    %c1 = arith.constant 1 : index
    %c0_12 = arith.constant 0 : index
    %c0_13 = arith.constant 0 : index
    %15 = vector.load %arg4[%c1, %c0_12, %c0_13] : memref<2x32x32xf32, #tpu.memory_space<vmem>>, vector<1x32x32xf32>
    %16 = vector.shape_cast %15 : vector<1x32x32xf32> to vector<32x32xf32>
    %cst_14 = arith.constant dense<0.000000e+00> : vector<32x128xf32>
    %17 = tpu.matmul %16, %14, %cst_14 {dimension_numbers = #tpu.dot_dimension_numbers<[1], [0], [0], [1], [0, 0, 1, 1], [], []>} : vector<32x32xf32>, vector<32x128xf32>, vector<32x128xf32> -> vector<32x128xf32>
    %c1_15 = arith.constant 1 : index
    %c0_16 = arith.constant 0 : index
    %c0_17 = arith.constant 0 : index
    %18 = vector.load %arg5[%c1_15, %c0_16, %c0_17] : memref<2x32x1xf32, #tpu.memory_space<vmem>>, vector<1x32x1xf32>
    %19 = vector.shape_cast %18 : vector<1x32x1xf32> to vector<32x1xf32>
    %20 = vector.broadcast %19 : vector<32x1xf32> to vector<32x128xf32>
    %21 = arith.addf %17, %20 : vector<32x128xf32>
    %22 = math.tanh %21 : vector<32x128xf32>
    %c0_18 = arith.constant 0 : index
    %c0_19 = arith.constant 0 : index
    %23 = vector.load %arg6[%c0_18, %c0_19] : memref<3x32xf32, #tpu.memory_space<vmem>>, vector<3x32xf32>
    %cst_20 = arith.constant dense<0.000000e+00> : vector<3x128xf32>
    %24 = tpu.matmul %23, %22, %cst_20 {dimension_numbers = #tpu.dot_dimension_numbers<[1], [0], [0], [1], [0, 0, 1, 1], [], []>} : vector<3x32xf32>, vector<32x128xf32>, vector<3x128xf32> -> vector<3x128xf32>
    %c0_21 = arith.constant 0 : index
    %c0_22 = arith.constant 0 : index
    %25 = vector.load %arg7[%c0_21, %c0_22] : memref<3x1xf32, #tpu.memory_space<vmem>>, vector<3x1xf32>
    %26 = vector.broadcast %25 : vector<3x1xf32> to vector<3x128xf32>
    %27 = arith.addf %24, %26 : vector<3x128xf32>
    %c0_23 = arith.constant 0 : index
    %c0_24 = arith.constant 0 : index
    %28 = vector.load %arg8[%c0_23, %c0_24] : memref<3x128xf32, #tpu.memory_space<vmem>>, vector<3x128xf32>
    tpu.vector_store %arg8[%c0_23, %c0_24], %27 {strides = array<i32>} : memref<3x128xf32, #tpu.memory_space<vmem>>, vector<3x128xf32>,
    return
  }
  func.func @transform_0(%arg0: i32) -> (i32, i32) {
    %c0_i32 = arith.constant 0 : i32
    %c0_i32_0 = arith.constant 0 : i32
    return %c0_i32, %arg0 : i32, i32
  }
  func.func @transform_1(%arg0: i32) -> (i32, i32) {
    %c0_i32 = arith.constant 0 : i32
    %c0_i32_0 = arith.constant 0 : i32
    %c0_i32_1 = arith.constant 0 : i32
    return %c0_i32, %c0_i32_0 : i32, i32
  }
  func.func @transform_2(%arg0: i32) -> (i32, i32) {
    %c0_i32 = arith.constant 0 : i32
    %c0_i32_0 = arith.constant 0 : i32
    %c0_i32_1 = arith.constant 0 : i32
    return %c0_i32, %c0_i32_0 : i32, i32
  }
  func.func @transform_3(%arg0: i32) -> (i32, i32, i32) {
    %c0_i32 = arith.constant 0 : i32
    %c0_i32_0 = arith.constant 0 : i32
    %c0_i32_1 = arith.constant 0 : i32
    %c0_i32_2 = arith.constant 0 : i32
    return %c0_i32, %c0_i32_0, %c0_i32_1 : i32, i32, i32
  }
  func.func @transform_4(%arg0: i32) -> (i32, i32, i32) {
    %c0_i32 = arith.constant 0 : i32
    %c0_i32_0 = arith.constant 0 : i32
    %c0_i32_1 = arith.constant 0 : i32
    %c0_i32_2 = arith.constant 0 : i32
    return %c0_i32, %c0_i32_0, %c0_i32_1 : i32, i32, i32
  }
  func.func @transform_5(%arg0: i32) -> (i32, i32) {
    %c0_i32 = arith.constant 0 : i32
    %c0_i32_0 = arith.constant 0 : i32
    %c0_i32_1 = arith.constant 0 : i32
    return %c0_i32, %c0_i32_0 : i32, i32
  }
  func.func @transform_6(%arg0: i32) -> (i32, i32) {
    %c0_i32 = arith.constant 0 : i32
    %c0_i32_0 = arith.constant 0 : i32
    %c0_i32_1 = arith.constant 0 : i32
    return %c0_i32, %c0_i32_0 : i32, i32
  }
  func.func @transform_7(%arg0: i32) -> (i32, i32) {
    %c0_i32 = arith.constant 0 : i32
    %c0_i32_0 = arith.constant 0 : i32
    return %c0_i32, %arg0 : i32, i32
  }
}

</mosaic_0001>

<bundles_post_ra>
// kernel: embedding_forward.1
= control target key start
LH: loop header
LB: loop body
LE: loop exit
PB: predicated region body
PF: predicated region fallthrough
CT: control target
= control target key end

     0   :  { %12 = vsyncpa [#allocation3], 0  ;;  %s1287_s0 = inlined_call_operand.vmem [shape: f32[3,256], index: 0, kind: input, shape index: {}]   ;;  %s1288_s1 = inlined_call_operand.vmem [shape: f32[32,3], index: 1, kind: input, shape index: {}]   ;;  %s1289_s2 = inlined_call_operand.vmem [shape: f32[32,1], index: 2, kind: input, shape index: {}]   ;;  %s1290_s3 = inlined_call_operand.vmem [shape: f32[2,32,32], index: 3, kind: input, shape index: {}]   ;;  %s1291_s4 = inlined_call_operand.vmem [shape: f32[2,32,1], index: 4, kind: input, shape index: {}]   ;;  %s1292_s5 = inlined_call_operand.vmem [shape: f32[3,32], index: 5, kind: input, shape index: {}]   ;;  %s1293_s6 = inlined_call_operand.vmem [shape: f32[3,1], index: 6, kind: input, shape index: {}]   ;;  %s1294_s7 = inlined_call_operand.hbm [shape: f32[3,256], index: 7, kind: output, shape index: {}]  }
   0x1   :  { %14 = vsyncpa [#allocation3 + $0x1], 0  ;;  %s1103_s24 = smov 0   ;;  %s1105_s25 = smov 0  }
   0x2   :  { %s1107_s26 = smov 0   ;;  %s1109_s27 = smov 0  }
   0x3 LB: > { %s1124_s28 = sadd.s32 4294967295, %s1057_s27   ;;  %s824_s29 = sadd.s32 4294967294, %s1057_s27   ;;  %s1057_s27 = sphi %s1109_s27, %s1300_s27   ;;  %s1053_s26 = sphi %s1107_s26, %s1299_s26   ;;  %s1049_s25 = sphi %s1105_s25, %s1298_s25   ;;  %s1045_s24 = sphi %s1103_s24, %s1297_s24  }
   0x4   : > { %s1128_s30 = sadd.s32 1, %s1057_s27   ;;  %s179_s8 = sadd.s32 1, %s1053_s26 }
   0x5   : > { %s176_s9 = ssub.s32 %s1057_s27, %s1128_s30  ;;  %p189_p0 = scmp.ne.s32.totalorder %s1053_s26, %s1049_s25 }
   0x6   : > { %p177_p1 = scmp.eq.s32.totalorder %s176_s9, 0  ;;  %p190_p2 = scmp.eq.s32.totalorder %s1124_s28, 1 }
   0x7   : > { %p195_p3 = scmp.ne.s32.totalorder %s1049_s25, %s1045_s24  ;;  %p196_p4 = scmp.eq.s32.totalorder %s824_s29, 1 }
   0x8   : > { %s1139_s10 = scalar_select %p177_p1, %s1053_s26, %s179_s8  }
   0x9   : > { %p1141_p5 = por %p190_p2, %p189_p0  ;;  %p1145_p6 = por %p196_p4, %p195_p3 }
   0xa   : > { %p827_p7 = scmp.ge.s32.totalorder %s1057_s27, 1  ;;  %p239_p8 = scmp.lt.s32.totalorder %s1057_s27, 3 }
   0xc   : > { %p240_p9 = pnand %p827_p7, %p239_p8 }
   0xd   : > { %p270_p10 = scmp.lt.s32.totalorder (!%p240_p9), %s1124_s28, 1  ;;  %s267_s14 = sand.u32 (!%p240_p9), 1, %s1049_s25  }
   0xe   : > { %243 = sbr.rel (%p240_p9) target bundleno = 896 (0x380), region = 48  ;;  %s828_s15 = sshll.u32 (!%p240_p9), %s267_s14, 2 }
   0xf   : > { %s853_s16 = sshll.u32 (!%p240_p9), %s1124_s28, 6  ;;  %s752_s22 = scalar_lea.sflag (!%p240_p9), [#allocation3], %s267_s14 }
  0x10   : > { %s1252_s21 = scalar_lea.hbm (!%p240_p9), %s1294_s7, %s853_s16 }
  0x13   : > { %v274_v0 = vld [vmem:[%s1288_s1] sm:$0xff]  ;;  %vm303_vm0 = vcmask 23552   ;;  %v282_v1 = vld [vmem:[%s1289_s2 + $0x18] sm:$0xff]  ;;  %s271_s17 = scalar_select %p270_p10, %s1124_s28, 1  ;;  %v1059_v2 = vmov 0   ;;  %v280_v3 = vld [vmem:[%s1289_s2 + $0x8] sm:$0xff] }
  0x14   : > { %884 = vmatprep.mubr.msk.f32.mxu0 %vm303_vm0, %v274_v0  ;;  %971 = vset.pattern.permute.xlu0 %v1059_v2  ;;  %vm316_vm1 = vcmask 1042432   ;;  %v281_v4 = vld [vmem:[%s1289_s2 + $0x10] sm:$0xff]  ;;  %v279_v5 = vld [vmem:[%s1289_s2] sm:$0xff]  ;;  %v275_v7 = vld [vmem:[%s1288_s1 + $0x8] sm:$0xff]  ;;  %vm437_vm2 = vcmask 261120   ;;  %v1060_v59 = vmov 0.0  }
  0x15   : > { %972 = vset.pattern.permute.xlu1 %v1059_v2  ;;  %300 = vperm.xlu0 %971, %v282_v1   ;;  %s829_s20 = sshll.u32 %s271_s17, 2  ;;  %v276_v8 = vld [vmem:[%s1288_s1 + $0x10] sm:$0xff]  ;;  %v416_v9 = vld [vmem:[%s1291_s4 + $0x18] sm:$0xff]  ;;  %v414_v12 = vld [vmem:[%s1291_s4 + $0x8] sm:$0xff]  ;;  %vm1061_vm3 = vmmov 0   ;;  %s269_s17 = scalar_lea.vmem [#allocation2], %s828_s15 }
  0x16   : > { %290 = vperm.xlu1 %972, %v280_v3   ;;  %s273_s8 = scalar_lea.vmem %s1287_s0, %s829_s20  ;;  %v415_v10 = vld [vmem:[%s1291_s4 + $0x10] sm:$0xff]  ;;  %v277_v11 = vld [vmem:[%s1288_s1 + $0x18] sm:$0xff]  ;;  %v413_v13 = vld [vmem:[%s1291_s4] sm:$0xff]  ;;  %s765_s18 = sshll.u32 %s269_s17, 4  ;;  %s766_s18 = int_to_ptr.vmem [resolvable:$true] %s765_s18 }
  0x17   : > { %v278_v6 = vld [vmem:[%s273_s8] sm:$0x7]  ;;  %v846_v14 = vld [vmem:[%s1291_s4 + $0x38] sm:$0xff]  ;;  %v845_v15 = vld [vmem:[%s1291_s4 + $0x30] sm:$0xff]  ;;  %s997_s23 = scalar_lea.vmem %s766_s18, 64  ;;  %s1062_s28 = smov [#allocation2]  }
  0x18   : > { %882 = vmatprep.subr.msk.mxu0 %vm316_vm1, %v278_v6  ;;  %v844_v16 = vld [vmem:[%s1291_s4 + $0x28] sm:$0xff]  ;;  %v843_v17 = vld [vmem:[%s1291_s4 + $0x20] sm:$0xff]  ;;  %v411_v37 = vld [vmem:[%s1290_s3 + $0x10] sm:$0xff]  ;;  %p998_p11 = scmp.ne.s32.totalorder %s766_s18, %s997_s23  ;;  %s1001_s29 = sshll.u32 %s1062_s28, 4  ;;  %s1002_s29 = int_to_ptr.vmem [resolvable:$false] %s1001_s29 }
  0x19   : > { %295 = vperm.xlu0 %971, %v281_v4   ;;  %883 = vmatpush3.msk.msra.mxu0 %vm316_vm1, %v278_v6  ;;  %v671_v18 = vld [vmem:[%s1293_s6] sm:$0x7]  ;;  %v410_v36 = vld [vmem:[%s1290_s3 + $0x8] sm:$0xff]  ;;  %v412_v38 = vld [vmem:[%s1290_s3 + $0x18] sm:$0xff]  ;;  %s1003_s8 = scalar_lea.vmem %s1002_s29, 128  ;;  %p1004_p0 = scmp.lt.s32.totalorder %s766_s18, %s1002_s29 }
  0x1a   : > { %285 = vperm.xlu1 %972, %v279_v5   ;;  %885 = vmatmul.mubr.msk.f32.vlgmr.msra.gmra.mxu0 %vm303_vm0, %v275_v7  ;;  %v409_v19 = vld [vmem:[%s1290_s3] sm:$0xff]  ;;  %v840_v56 = vld [vmem:[%s1290_s3 + $0x28] sm:$0xff]  ;;  %v841_v57 = vld [vmem:[%s1290_s3 + $0x30] sm:$0xff]  ;;  %p999_p12 = pnand %p998_p11, %p1141_p5  ;;  %p1005_p1 = scmp.lt.s32.totalorder %s1003_s8, %s997_s23 }
  0x1b   : > { %887 = vmatprep.mubr.msk.f32.mxu0 %vm303_vm0, %v276_v8  ;;  %898 = vmatprep.mubr.msk.f32.mxu1 %vm437_vm2, %v409_v19  ;;  %v839_v39 = vld [vmem:[%s1290_s3 + $0x20] sm:$0xff]  ;;  %v842_v58 = vld [vmem:[%s1290_s3 + $0x38] sm:$0xff] }
  0x1c   : > { %p1000_p13 = pneg %p999_p12  ;;  %p1006_p2 = por %p1005_p1, %p1004_p0 }
  0x1d   : > { %434 = vperm.xlu0 %971, %v416_v9  }
  0x1e   : > { %429 = vperm.xlu1 %972, %v415_v10   ;;  %888 = vmatmul.mubr.msk.f32.gmra.mxu0 %vm303_vm0, %v277_v11  ;;  %v670_v11 = vld [vmem:[%s1292_s5] sm:$0x7]  ;;  %p1007_p3 = pnand %p1006_p2, %p1000_p13 }
  0x1f   : > { %912 = vmatprep.mubr.msk.f32.mxu0 %vm437_vm2, %v839_v39 }
  0x21   : > { %424 = vperm.xlu0 %971, %v414_v12  }
  0x22   : > { %419 = vperm.xlu1 %972, %v413_v13  }
  0x25   : > { %566 = vperm.xlu0 %971, %v846_v14  }
  0x26   : > { %561 = vperm.xlu1 %972, %v845_v15  }
  0x29   : > { %556 = vperm.xlu0 %971, %v844_v16  }
  0x2a   : > { %551 = vperm.xlu1 %972, %v843_v17  }
  0x2d   : > { %674 = vperm.xlu0 %971, %v671_v18  }
  0x90   : > { %v301_v20 = vpop.permute.xlu0 %300 }
  0x91   : > { %v291_v22 = vpop.permute.xlu1 %290 }
  0x94   : > { %v296_v26 = vpop.permute.xlu0 %295 }
  0x95   : > { %v286_v30 = vpop.permute.xlu1 %285 }
  0x98   : > { %v435_v40 = vpop.permute.xlu0 %434 }
  0x99   : > { %v430_v42 = vpop.permute.xlu1 %429 }
  0x9c   : > { %v425_v46 = vpop.permute.xlu0 %424 }
  0x9d   : > { %v420_v50 = vpop.permute.xlu1 %419 }
  0xa0   : > { %v567_v60 = vpop.permute.xlu0 %566 }
  0xa1   : > { %v562_v62 = vpop.permute.xlu1 %561 }
  0xa4   : > { %v557_v2 = vpop.permute.xlu0 %556 }
  0xa5   : > { %v552_v6 = vpop.permute.xlu1 %551 }
  0xa8   : > { %v675_v13 = vpop.permute.xlu0 %674 }
  0xda   : > { %v886_v21 = vpop.f32.mrf.mxu0 }
  0xdb   : > { %v392_v28 = vadd.f32 %v886_v21, %v291_v22 }
  0xdc   : > { %v386_v23 = vpop.f32.mrf.mxu0 }
  0xdd   : > { %v387_v31 = vadd.f32 %v386_v23, %v286_v30 }
  0xde   : > { %v889_v24 = vpop.f32.mrf.mxu0 }
  0xdf   : > { %v402_v25 = vadd.f32 %v889_v24, %v301_v20 }
  0xe0   : > { %v396_v27 = vpop.f32.mrf.mxu0 }
  0xe1   : > { %973 = vtanh.f32 %v402_v25  ;;  %v397_v29 = vadd.f32 %v396_v27, %v296_v26 }
  0xe3   : > { %975 = vtanh.f32 %v397_v29 }
  0xe4   : > { %977 = vtanh.f32 %v392_v28 }
  0xe5   : > { %979 = vtanh.f32 %v387_v31 }
  0xee   : > { %v974_v32 = vpop.eup %973 }
  0xef   : > { %890 = vmatprep.subr.mxu1 %v974_v32 }
  0xf0   : > { %v976_v33 = vpop.eup %975  ;;  %891 = vmatpush3.msra.mxu1 %v974_v32 }
  0xf1   : > { %892 = vmatprep.subr.mxu1 %v976_v33  ;;  %v978_v34 = vpop.eup %977 }
  0xf2   : > { %893 = vmatpush3.msra.mxu1 %v976_v33  ;;  %v980_v35 = vpop.eup %979 }
  0xf3   : > { %894 = vmatprep.subr.mxu1 %v978_v34 }
  0xf4   : > { %895 = vmatpush3.msra.mxu1 %v978_v34 }
  0xf5   : > { %896 = vmatprep.subr.mxu1 %v980_v35 }
  0xf6   : > { %897 = vmatpush3.msra.mxu1 %v980_v35 }
  0xf7   : > { %899 = vmatmul.mubr.msk.f32.vlgmr.msra.gmra.mxu1 %vm437_vm2, %v410_v36  ;;  %918 = vmatprep.subr.mxu1 %v1060_v59 }
  0xf8   : > { %901 = vmatprep.mubr.msk.f32.mxu1 %vm437_vm2, %v411_v37 }
  0xfb   : > { %902 = vmatmul.mubr.msk.f32.gmra.mxu1 %vm437_vm2, %v412_v38 }
  0xfc   : > { %926 = vmatprep.mubr.msk.f32.mxu1 %vm1061_vm3, %v1060_v59 }
 0x1b7   : > { %v900_v41 = vpop.f32.mrf.mxu1 }
 0x1b8   : > { %v522_v48 = vadd.f32 %v900_v41, %v425_v46 }
 0x1b9   : > { %v516_v43 = vpop.f32.mrf.mxu1 }
 0x1ba   : > { %v517_v51 = vadd.f32 %v516_v43, %v420_v50 }
 0x1bb   : > { %v903_v44 = vpop.f32.mrf.mxu1 }
 0x1bc   : > { %v532_v45 = vadd.f32 %v903_v44, %v435_v40 }
 0x1bd   : > { %v526_v47 = vpop.f32.mrf.mxu1 }
 0x1be   : > { %981 = vtanh.f32 %v532_v45  ;;  %v527_v49 = vadd.f32 %v526_v47, %v430_v42 }
 0x1c0   : > { %983 = vtanh.f32 %v527_v49 }
 0x1c1   : > { %985 = vtanh.f32 %v522_v48 }
 0x1c2   : > { %987 = vtanh.f32 %v517_v51 }
 0x1cb   : > { %v982_v52 = vpop.eup %981 }
 0x1cc   : > { %904 = vmatprep.subr.mxu0 %v982_v52 }
 0x1cd   : > { %v984_v53 = vpop.eup %983  ;;  %905 = vmatpush3.msra.mxu0 %v982_v52 }
 0x1ce   : > { %906 = vmatprep.subr.mxu0 %v984_v53  ;;  %v986_v54 = vpop.eup %985 }
 0x1cf   : > { %907 = vmatpush3.msra.mxu0 %v984_v53  ;;  %v988_v55 = vpop.eup %987 }
 0x1d0   : > { %908 = vmatprep.subr.mxu0 %v986_v54 }
 0x1d1   : > { %909 = vmatpush3.msra.mxu0 %v986_v54 }
 0x1d2   : > { %910 = vmatprep.subr.mxu0 %v988_v55 }
 0x1d3   : > { %911 = vmatpush3.msra.mxu0 %v988_v55 }
 0x1d4   : > { %913 = vmatmul.mubr.msk.f32.vlgmr.msra.gmra.mxu0 %vm437_vm2, %v840_v56 }
 0x1d5   : > { %915 = vmatprep.mubr.msk.f32.mxu0 %vm437_vm2, %v841_v57 }
 0x1d8   : > { %916 = vmatmul.mubr.msk.f32.gmra.mxu0 %vm437_vm2, %v842_v58 }
 0x294   : > { %v914_v61 = vpop.f32.mrf.mxu0 }
 0x295   : > { %v653_v4 = vadd.f32 %v914_v61, %v557_v2 }
 0x296   : > { %v647_v63 = vpop.f32.mrf.mxu0 }
 0x297   : > { %v648_v7 = vadd.f32 %v647_v63, %v552_v6 }
 0x298   : > { %v917_v0 = vpop.f32.mrf.mxu0 }
 0x299   : > { %v663_v1 = vadd.f32 %v917_v0, %v567_v60 }
 0x29a   : > { %v657_v3 = vpop.f32.mrf.mxu0 }
 0x29b   : > { %989 = vtanh.f32 %v663_v1  ;;  %v658_v5 = vadd.f32 %v657_v3, %v562_v62 }
 0x29d   : > { %991 = vtanh.f32 %v658_v5 }
 0x29e   : > { %993 = vtanh.f32 %v653_v4 }
 0x29f   : > { %995 = vtanh.f32 %v648_v7 }
 0x2a8   : > { %v990_v8 = vpop.eup %989 }
 0x2a9   : > { %919 = vmatpush3.msra.mxu1 %v990_v8 }
 0x2aa   : > { %v992_v9 = vpop.eup %991  ;;  %920 = vmatprep.subr.mxu1 %v1060_v59 }
 0x2ab   : > { %921 = vmatpush3.msra.mxu1 %v992_v9  ;;  %v994_v10 = vpop.eup %993 }
 0x2ac   : > { %922 = vmatprep.subr.mxu1 %v1060_v59  ;;  %v996_v12 = vpop.eup %995 }
 0x2ad   : > { %923 = vmatpush3.msra.mxu1 %v994_v10 }
 0x2ae   : > { %924 = vmatprep.subr.mxu1 %v1060_v59 }
 0x2af   : > { %925 = vmatpush3.msra.mxu1 %v996_v12 }
 0x2b0   : > { %927 = vmatmul.mubr.msk.f32.vlgmr.msra.gmra.mxu1 %vm437_vm2, %v670_v11 }
 0x370   : > { %v746_v14 = vpop.f32.mrf.mxu1 }
 0x371   : > { %v747_v15 = vadd.f32 %v746_v14, %v675_v13 }
 0x372   : > { %v928_v16 = vpop.f32.mrf.mxu1 }
 0x373   : > { %750 = vst [vmem:[%s269_s17] sm:$0x7] %v747_v15 }
 0x374   : > { %1010 = shalt.err (!%p1007_p3)
}
 0x375   : > { %s1011_s9 = scalar_lea.hbm %s1252_s21, 64  ;;  %s1015_s15 = scalar_lea.hbm %s1294_s7, 128 }
 0x376   : > { %p1012_p4 = scmp.ne.s32.totalorder %s1252_s21, %s1011_s9  ;;  %p1016_p9 = scmp.lt.s32.totalorder %s1252_s21, %s1294_s7 }
 0x377   : > { %p1017_p10 = scmp.lt.s32.totalorder %s1015_s15, %s1011_s9 }
 0x378   : > { %p1013_p7 = pnand %p1012_p4, %p1141_p5 }
 0x379   : > { %p1018_p11 = por %p1017_p10, %p1016_p9 }
 0x37a   : > { %p1014_p8 = pneg %p1013_p7 }
 0x37c   : > { %p1019_p12 = pnand %p1018_p11, %p1014_p8 }
 0x37e   : > { %1022 = shalt.err (!%p1019_p12)
}
 0x37f   : > { %929 = dma.vmem_to_hbm [thread:$0]  (%p1141_p5), %s766_s18, 64, %s1252_s21, %s752_s22  }
 0x380 PF: > { %p935_p13 = scmp.ge.s32.totalorder %s1057_s27, 2  ;;  %s777_s19 = sand.u32 1, %s1045_s24  }
 0x381   : > { %s778_s20 = scalar_lea.sflag [#allocation3], %s777_s19 }
 0x382   : > { %p932_p0 = pnand %p935_p13, %p1145_p6 }
 0x384   : > { %p933_p1 = pneg %p932_p0 }
 0x386   : > { %1040 = dma.done.wait (%p933_p1), %s778_s20, 64  }
 0x387   : > { %1042 = vsyncadd (%p933_p1), %s778_s20, 4294967232  ;;  %p17_p2 = scmp.ge.s32.totalorder %s1128_s30, 4   ;;  %s1297_s24 = smov %s1049_s25 }
 0x388   : > { %s1298_s25 = smov %s1053_s26  ;;  %s1299_s26 = smov %s1139_s10 }
 0x389   : > { %s1300_s27 = smov %s1128_s30  ;;  %19 = sbr.rel (!%p17_p2) target bundleno = 3 (0x3), region = 85 }
 0x38e   :  { %783 = vsyncpa [#allocation3], 1 }
 0x38f   :  { %785 = vsyncpa [#allocation3 + $0x1], 1 }

</bundles_post_ra>
